<compile_context>
chip_gen: v7x
topology: tpu7x:2x2x1
jax: 0.10.0
libtpu: 0.0.40
codegen_flags: <defaults>
</compile_context>

<pallas_src>
import math

import jax
import jax.numpy as jnp
from jax.experimental import pallas as pl
from jax.experimental.pallas import tpu as pltpu

LANE = 128             # lane width (fast axis)
MAX_BLOCK_ROWS = 1024  # sublane rows per grid step (1024x128 f32 = 512 KiB / buffer)
NCORES = 2             # leading "parallel" axis: both TCs on v7x, harmless elsewhere

EPS = 1e-8
LOG_EPS = math.log(EPS)        # lower clamp of log-probabilities
LOG_1M_EPS = math.log1p(-EPS)  # upper clamp of log-probabilities


def _round_up(a, b):
    return (a + b - 1) // b * b


@jax.jit
def bce_loss(y_pred, y_real, weight):
    """-mean( w1*y*log(clip(sigmoid(x))) + w0*(1-y)*log(clip(1-sigmoid(x))) )."""
    n = y_pred.size                                  # static under jit
    rows = -(-n // LANE)
    block_rows = min(MAX_BLOCK_ROWS, _round_up(rows, 8))
    blocks_per_core = -(-rows // (NCORES * block_rows))
    total_blocks = NCORES * blocks_per_core
    covered_rows = total_blocks * block_rows
    block_elems = block_rows * LANE
    covered = covered_rows * LANE

    # Zero-pad flattened inputs (original dtype, no wrapper-side cast) so the grid
    # exactly covers the slab; the pad region is masked inside the kernel.  For
    # nicely shaped inputs pad == 0 and no copy is made.
    pad = covered - n
    flat_pred = y_pred.reshape(-1)
    flat_real = y_real.reshape(-1)
    if pad > 0:
        flat_pred = jnp.pad(flat_pred, (0, pad))
        flat_real = jnp.pad(flat_real, (0, pad))
    pred2d = flat_pred.reshape(covered_rows, LANE)
    real2d = flat_real.reshape(covered_rows, LANE)

    has_pad = pad > 0
    first_pad_block = n // block_elems          # first global block containing padding
    rem = n - first_pad_block * block_elems     # valid elements in that block

    def kernel(w_ref, pred_ref, real_ref, out_ref):
        c = pl.program_id(0)   # core split ("parallel")
        j = pl.program_id(1)   # reduction over blocks ("arbitrary")

        @pl.when(j == 0)
        def _init():
            out_ref[...] = jnp.zeros_like(out_ref)

        x = pred_ref[...].astype(jnp.float32)
        y = real_ref[...].astype(jnp.float32)

        # Stable softplus(-x):  log(1 + exp(-x)) = log1p(exp(-|x|)) + max(-x, 0)
        sp = jnp.log1p(jnp.exp(-jnp.abs(x))) + jnp.maximum(-x, 0.0)
        #  log(clip(sigmoid(x), eps, 1-eps))     = clip(-softplus(-x),     log eps, log(1-eps))
        #  log(clip(1 - sigmoid(x), eps, 1-eps)) = clip(-softplus(-x) - x, log eps, log(1-eps))
        log_p = jnp.clip(-sp, LOG_EPS, LOG_1M_EPS)
        log_1mp = jnp.clip(-sp - x, LOG_EPS, LOG_1M_EPS)

        val = y * log_p * w_ref[1] + (1.0 - y) * log_1mp * w_ref[0]

        if has_pad:
            gb = c * blocks_per_core + j        # global block index

            @pl.when(gb < first_pad_block)
            def _acc_full():                    # steady state: no mask work at all
                out_ref[...] += val

            @pl.when(gb >= first_pad_block)
            def _acc_masked():                  # only blocks touching the pad tail
                row = jax.lax.broadcasted_iota(jnp.int32, val.shape, 0)
                col = jax.lax.broadcasted_iota(jnp.int32, val.shape, 1)
                local = row * LANE + col
                valid = rem - (gb - first_pad_block) * block_elems  # small, no overflow
                out_ref[...] += jnp.where(local < valid, val, 0.0)
        else:
            out_ref[...] += val

    w_arr = jnp.asarray(weight, dtype=jnp.float32).reshape(2)

    partial = pl.pallas_call(
        kernel,
        out_shape=jax.ShapeDtypeStruct((NCORES * block_rows, LANE), jnp.float32),
        grid_spec=pltpu.PrefetchScalarGridSpec(
            num_scalar_prefetch=1,
            grid=(NCORES, blocks_per_core),
            in_specs=[
                pl.BlockSpec((block_rows, LANE),
                             lambda c, j, w: (c * blocks_per_core + j, 0)),
                pl.BlockSpec((block_rows, LANE),
                             lambda c, j, w: (c * blocks_per_core + j, 0)),
            ],
            out_specs=pl.BlockSpec((block_rows, LANE), lambda c, j, w: (c, 0)),
        ),
        compiler_params=pltpu.CompilerParams(
            dimension_semantics=("parallel", "arbitrary")),
    )(w_arr, pred2d, real2d)

    # Tiny final reduction + negate + mean (n is a trace-time constant).
    return -jnp.sum(partial) / n


class BCELoss:
    """Mirrors the PyTorch module: weighted BCE on logits via the Pallas kernel."""

    def __init__(self, weight):
        self.weight = weight

    def forward(self, y_pred, y_real):
        return bce_loss(y_pred, y_real, self.weight)

    __call__ = forward


def bce_loss_ref(y_pred, y_real, weight):
    """Pure-JAX reference mirroring the PyTorch bce_loss exactly."""
    p = jnp.clip(jax.nn.sigmoid(y_pred.astype(jnp.float32)), EPS, 1.0 - EPS)
    y = y_real.astype(jnp.float32)
    term1 = y * jnp.log(p) * weight[1]
    term2 = (1.0 - y) * jnp.log(1.0 - p) * weight[0]
    return -jnp.mean(term1 + term2)


if __name__ == "__main__":
    key = jax.random.PRNGKey(0)
    k1, k2 = jax.random.split(key)

    # NCHW inputs: batch=2, channels=4, spatial=16x16
    x_shape = (2, 4, 16, 16)
    y_pred = jax.random.normal(k1, x_shape, dtype=jnp.float32)
    y_real = (jax.random.uniform(k2, x_shape) > 0.5).astype(jnp.float32)

    # Class weights [w0 (negative class), w1 (positive class)].
    weight = jnp.array([0.25, 0.75], dtype=jnp.float32)

    loss = BCELoss(weight)(y_pred, y_real)
    loss = jax.block_until_ready(loss)

    ref = bce_loss_ref(y_pred, y_real, weight)
    assert jnp.allclose(loss, ref, rtol=1e-5, atol=1e-6), (loss, ref)

    print("KERNEL_OK")
</pallas_src>

<mosaic_0001>
module attributes {stable_mosaic.version = 11 : i64} {
  func.func @kernel(%arg0: i32, %arg1: i32, %arg2: memref<2xf32, #tpu.memory_space<smem>>, %arg3: memref<16x128xf32, #tpu.memory_space<vmem>>, %arg4: memref<16x128xf32, #tpu.memory_space<vmem>>, %arg5: memref<16x128xf32, #tpu.memory_space<vmem>>) attributes {dimension_semantics = [#tpu.dimension_semantics<parallel>, #tpu.dimension_semantics<arbitrary>], iteration_bounds = array<i64: 2, 1>, scalar_prefetch = 1 : i64, scratch_operands = 0 : i64, tpu.core_type = #tpu.core_type<tc>, window_params = [{transform_indices = @transform_0, window_bounds = array<i64: 16, 128>}, {transform_indices = @transform_1, window_bounds = array<i64: 16, 128>}, {transform_indices = @transform_2, window_bounds = array<i64: 16, 128>}]} {
    %c0_i32 = arith.constant 0 : i32
    %0 = arith.cmpi eq, %arg1, %c0_i32 : i32
    %1 = arith.extui %0 : i1 to i32
    %c0_i32_0 = arith.constant 0 : i32
    %2 = arith.cmpi ne, %1, %c0_i32_0 : i32
    scf.if %2 {
      %cst_18 = arith.constant 0.000000e+00 : f32
      %47 = vector.broadcast %cst_18 : f32 to vector<16x128xf32>
      %c0_19 = arith.constant 0 : index
      %c0_20 = arith.constant 0 : index
      %48 = vector.load %arg5[%c0_19, %c0_20] : memref<16x128xf32, #tpu.memory_space<vmem>>, vector<16x128xf32>
      tpu.vector_store %arg5[%c0_19, %c0_20], %47 {strides = array<i32>} : memref<16x128xf32, #tpu.memory_space<vmem>>, vector<16x128xf32>,
    } else {
    }
    %c0 = arith.constant 0 : index
    %c0_1 = arith.constant 0 : index
    %3 = vector.load %arg3[%c0, %c0_1] : memref<16x128xf32, #tpu.memory_space<vmem>>, vector<16x128xf32>
    %c0_2 = arith.constant 0 : index
    %c0_3 = arith.constant 0 : index
    %4 = vector.load %arg4[%c0_2, %c0_3] : memref<16x128xf32, #tpu.memory_space<vmem>>, vector<16x128xf32>
    %5 = math.absf %3 : vector<16x128xf32>
    %cst = arith.constant 0.000000e+00 : f32
    %6 = vector.broadcast %cst : f32 to vector<16x128xf32>
    %7 = arith.subf %6, %5 : vector<16x128xf32>
    %8 = math.exp %7 : vector<16x128xf32>
    %9 = math.log1p %8 : vector<16x128xf32>
    %cst_4 = arith.constant 0.000000e+00 : f32
    %10 = vector.broadcast %cst_4 : f32 to vector<16x128xf32>
    %11 = arith.subf %10, %3 : vector<16x128xf32>
    %cst_5 = arith.constant 0.000000e+00 : f32
    %12 = vector.broadcast %cst_5 : f32 to vector<16x128xf32>
    %13 = arith.maximumf %11, %12 : vector<16x128xf32>
    %14 = arith.addf %9, %13 : vector<16x128xf32>
    %cst_6 = arith.constant 0.000000e+00 : f32
    %15 = vector.broadcast %cst_6 : f32 to vector<16x128xf32>
    %16 = arith.subf %15, %14 : vector<16x128xf32>
    %cst_7 = arith.constant -18.420681 : f32
    %cst_8 = arith.constant -9.99999993E-9 : f32
    %17 = vector.broadcast %cst_7 : f32 to vector<16x128xf32>
    %18 = arith.maximumf %17, %16 : vector<16x128xf32>
    %19 = vector.broadcast %cst_8 : f32 to vector<16x128xf32>
    %20 = arith.minimumf %19, %18 : vector<16x128xf32>
    %cst_9 = arith.constant 0.000000e+00 : f32
    %21 = vector.broadcast %cst_9 : f32 to vector<16x128xf32>
    %22 = arith.subf %21, %14 : vector<16x128xf32>
    %23 = arith.subf %22, %3 : vector<16x128xf32>
    %cst_10 = arith.constant -18.420681 : f32
    %cst_11 = arith.constant -9.99999993E-9 : f32
    %24 = vector.broadcast %cst_10 : f32 to vector<16x128xf32>
    %25 = arith.maximumf %24, %23 : vector<16x128xf32>
    %26 = vector.broadcast %cst_11 : f32 to vector<16x128xf32>
    %27 = arith.minimumf %26, %25 : vector<16x128xf32>
    %28 = arith.mulf %4, %20 : vector<16x128xf32>
    %c1 = arith.constant 1 : index
    %29 = memref.load %arg2[%c1] : memref<2xf32, #tpu.memory_space<smem>>
    %30 = vector.broadcast %29 : f32 to vector<16x128xf32>
    %31 = arith.mulf %28, %30 : vector<16x128xf32>
    %cst_12 = arith.constant 1.000000e+00 : f32
    %32 = vector.broadcast %cst_12 : f32 to vector<16x128xf32>
    %33 = arith.subf %32, %4 : vector<16x128xf32>
    %34 = arith.mulf %33, %27 : vector<16x128xf32>
    %c0_13 = arith.constant 0 : index
    %35 = memref.load %arg2[%c0_13] : memref<2xf32, #tpu.memory_space<smem>>
    %36 = vector.broadcast %35 : f32 to vector<16x128xf32>
    %37 = arith.mulf %34, %36 : vector<16x128xf32>
    %38 = arith.addf %31, %37 : vector<16x128xf32>
    %c1_i32 = arith.constant 1 : i32
    %39 = arith.muli %arg0, %c1_i32 : i32
    %40 = arith.addi %39, %arg1 : i32
    %c1_i32_14 = arith.constant 1 : i32
    %41 = arith.cmpi slt, %40, %c1_i32_14 : i32
    %42 = arith.extui %41 : i1 to i32
    %c0_i32_15 = arith.constant 0 : i32
    %43 = arith.cmpi ne, %42, %c0_i32_15 : i32
    scf.if %43 {
      %c0_18 = arith.constant 0 : index
      %c0_19 = arith.constant 0 : index
      %47 = vector.load %arg5[%c0_18, %c0_19] : memref<16x128xf32, #tpu.memory_space<vmem>>, vector<16x128xf32>
      %48 = arith.addf %47, %38 : vector<16x128xf32>
      %c0_20 = arith.constant 0 : index
      %c0_21 = arith.constant 0 : index
      %49 = vector.load %arg5[%c0_20, %c0_21] : memref<16x128xf32, #tpu.memory_space<vmem>>, vector<16x128xf32>
      tpu.vector_store %arg5[%c0_20, %c0_21], %48 {strides = array<i32>} : memref<16x128xf32, #tpu.memory_space<vmem>>, vector<16x128xf32>,
    } else {
    }
    %c1_i32_16 = arith.constant 1 : i32
    %44 = arith.cmpi sge, %40, %c1_i32_16 : i32
    %45 = arith.extui %44 : i1 to i32
    %c0_i32_17 = arith.constant 0 : i32
    %46 = arith.cmpi ne, %45, %c0_i32_17 : i32
    scf.if %46 {
      %47 = tpu.iota {dimensions = array<i32: 0>} : vector<16x128xi32>
      %48 = tpu.iota {dimensions = array<i32: 1>} : vector<16x128xi32>
      %c128_i32 = arith.constant 128 : i32
      %49 = vector.broadcast %c128_i32 : i32 to vector<16x128xi32>
      %50 = arith.muli %47, %49 : vector<16x128xi32>
      %51 = arith.addi %50, %48 : vector<16x128xi32>
      %c1_i32_18 = arith.constant 1 : i32
      %52 = arith.subi %40, %c1_i32_18 : i32
      %c2048_i32 = arith.constant 2048 : i32
      %53 = arith.muli %52, %c2048_i32 : i32
      %c0_i32_19 = arith.constant 0 : i32
      %54 = arith.subi %c0_i32_19, %53 : i32
      %c0_20 = arith.constant 0 : index
      %c0_21 = arith.constant 0 : index
      %55 = vector.load %arg5[%c0_20, %c0_21] : memref<16x128xf32, #tpu.memory_space<vmem>>, vector<16x128xf32>
      %56 = vector.broadcast %54 : i32 to vector<16x128xi32>
      %57 = arith.cmpi slt, %51, %56 : vector<16x128xi32>
      %cst_22 = arith.constant 0.000000e+00 : f32
      %58 = vector.broadcast %cst_22 : f32 to vector<16x128xf32>
      %59 = arith.select %57, %38, %58 : vector<16x128xi1>, vector<16x128xf32>
      %60 = arith.addf %55, %59 : vector<16x128xf32>
      %c0_23 = arith.constant 0 : index
      %c0_24 = arith.constant 0 : index
      %61 = vector.load %arg5[%c0_23, %c0_24] : memref<16x128xf32, #tpu.memory_space<vmem>>, vector<16x128xf32>
      tpu.vector_store %arg5[%c0_23, %c0_24], %60 {strides = array<i32>} : memref<16x128xf32, #tpu.memory_space<vmem>>, vector<16x128xf32>,
    } else {
    }
    return
  }
  func.func @transform_0(%arg0: i32, %arg1: i32, %arg2: memref<2xf32, #tpu.memory_space<smem>>) -> (i32, i32) {
    %c1_i32 = arith.constant 1 : i32
    %0 = arith.muli %arg0, %c1_i32 : i32
    %1 = arith.addi %0, %arg1 : i32
    %c0_i32 = arith.constant 0 : i32
    %c0_i32_0 = arith.constant 0 : i32
    return %1, %c0_i32 : i32, i32
  }
  func.func @transform_1(%arg0: i32, %arg1: i32, %arg2: memref<2xf32, #tpu.memory_space<smem>>) -> (i32, i32) {
    %c1_i32 = arith.constant 1 : i32
    %0 = arith.muli %arg0, %c1_i32 : i32
    %1 = arith.addi %0, %arg1 : i32
    %c0_i32 = arith.constant 0 : i32
    %c0_i32_0 = arith.constant 0 : i32
    return %1, %c0_i32 : i32, i32
  }
  func.func @transform_2(%arg0: i32, %arg1: i32, %arg2: memref<2xf32, #tpu.memory_space<smem>>) -> (i32, i32) {
    %c0_i32 = arith.constant 0 : i32
    %c0_i32_0 = arith.constant 0 : i32
    return %arg0, %c0_i32 : i32, i32
  }
}

</mosaic_0001>

<bundles_post_ra>
// kernel: bce_loss.1
= control target key start
LH: loop header
LB: loop body
LE: loop exit
PB: predicated region body
PF: predicated region fallthrough
CT: control target
= control target key end

     0   :  { %s561_s0 = inlined_call_operand.vmem [shape: f32[2], index: 0, kind: input, shape index: {}]   ;;  %s562_s1 = inlined_call_operand.vmem [shape: f32[32,128], index: 1, kind: input, shape index: {}]   ;;  %s563_s2 = inlined_call_operand.vmem [shape: f32[32,128], index: 2, kind: input, shape index: {}]   ;;  %s564_s3 = inlined_call_operand.vmem [shape: f32[32,128], index: 3, kind: output, shape index: {}]  }
   0x1   :  { %s8_s14 = sshll.u32 %s561_s0, 4  ;;  %s9_s14 = int_to_ptr.vmem [resolvable:$true] %s8_s14 }
   0x2   :  { %s439_s15 = scalar_lea.vmem %s9_s14, 16  ;;  %p444_p1 = scmp.lt.s32.totalorder %s9_s14, %s9_s14 }
   0x3   :  { %p440_p0 = scmp.ne.s32.totalorder %s9_s14, %s439_s15  ;;  %p445_p2 = scmp.lt.s32.totalorder %s439_s15, %s439_s15 }
   0x5   :  { %p446_p3 = por %p445_p2, %p444_p1 }
   0x7   :  { %p447_p4 = pnand %p446_p3, %p440_p0 }
   0x9   :  { %450 = shalt.err (!%p447_p4)  }
   0xa   :  { %s477_s16 = smov [#allocation3]  }
   0xb   :  { %11 = dma.vmem_to_smem %s9_s14, 16, %s477_s16, [#allocation2] }
   0xc   :  { %463 = dma.done.wait [#allocation2], 16 }
   0xd   :  { %464 = vsyncadd [#allocation2], 4294967280 }
   0xe   :  { %13 = sfence }
   0xf   :  { %s502_s17 = smov 0   ;;  %s504_s18 = smov 0  }
  0x10   :  { %s506_s19 = smov 0  }
  0x11 LB: > { %s31_s0 = sadd.s32 1, %s471_s18  ;;  %p391_p5 = scmp.ge.s32.totalorder %s475_s19, 1  ;;  %s475_s19 = sphi %s506_s19, %s19_s19   ;;  %s471_s18 = sphi %s504_s18, %s566_s18   ;;  %s467_s17 = sphi %s502_s17, %s565_s17  }
  0x12   : > { %p33_p6 = scmp.ge.s32.totalorder %s31_s0, 2  ;;  %p151_p7 = scmp.lt.s32.totalorder %s475_s19, 3 }
  0x14   : > { %s568_s0 = smov (%p33_p6, %s31_s0), 0  ;;  %p152_p8 = pnand %p391_p5, %p151_p7 }
  0x15   : > { %s392_s20 = sshll.u32 (!%p152_p8), %s467_s17, 1  ;;  %v478_v2 = vmov (!%p152_p8), 0.0   ;;  %s398_s28 = sld [smem:[#allocation3 + $0x1]] (!%p152_p8) }
  0x16   : > { %155 = sbr.rel (%p152_p8) target bundleno = 102 (0x66), region = 28  ;;  %p182_p9 = scmp.lt.s32.totalorder (!%p152_p8), %s392_s20, 3 }
  0x17   : > { %s266_s5 = sld [smem:[#allocation3]] (!%p152_p8)  ;;  %p399_p10 = scmp.ge.s32.totalorder (!%p152_p8), %s467_s17, 1 }
  0x1b   : > { %v259_v46 = vstv (!%p152_p8), %s398_s28 }
  0x1d   : > { %s570_s20 = smov (!%p182_p9, %s392_s20), 3  ;;  %v267_v52 = vstv %s266_s5 }
  0x1e   : > { %s523_s21 = sshll.u32 %s570_s20, 3 }
  0x1f   : > { %s185_s24 = scalar_lea.vmem %s562_s1, %s523_s21  ;;  %s533_s27 = scalar_lea.vmem %s564_s3, %s523_s21 }
  0x20   : > { %v208_v0 = vld [vmem:[%s185_s24] sm:$0xff]  ;;  %v209_v1 = vld [vmem:[%s185_s24 + $0x8] sm:$0xff]  ;;  %206 = vst [vmem:[%s533_s27] sm:$0xff] %v478_v2  ;;  %207 = vst [vmem:[%s533_s27 + $0x8] sm:$0xff] %v478_v2  ;;  %s193_s4 = scalar_lea.vmem %s563_s2, %s523_s21 }
  0x21   : > { %v212_v3 = vand.u32 2147483647, %v208_v0  ;;  %v213_v4 = vand.u32 2147483647, %v209_v1  ;;  %v238_v18 = vsub.f32 0.0, %v208_v0  ;;  %v239_v20 = vsub.f32 0.0, %v209_v1 }
  0x22   : > { %v210_v34 = vld [vmem:[%s193_s4] sm:$0xff]  ;;  %v211_v36 = vld [vmem:[%s193_s4 + $0x8] sm:$0xff] }
  0x23   : > { %v214_v5 = vsub.f32 0.0, %v212_v3  ;;  %v215_v6 = vsub.f32 0.0, %v213_v4  ;;  %v240_v24 = vmax.f32 %v238_v18, 0.0  ;;  %v241_v27 = vmax.f32 %v239_v20, 0.0 }
  0x24   : > { %v262_v43 = vsub.f32 1.0, %v210_v34  ;;  %v263_v47 = vsub.f32 1.0, %v211_v36 }
  0x25   : > { %v216_v7 = vmul.f32 1.442695, %v214_v5  ;;  %v218_v8 = vmul.f32 1.442695, %v215_v6 }
  0x27   : > { %431 = vpow2.f32 %v216_v7  ;;  %v277_v61 = vld [vmem:[%s533_s27] sm:$0xff] (!%p399_p10)  ;;  %v278_v62 = vld [vmem:[%s533_s27 + $0x8] sm:$0xff] (!%p399_p10) }
  0x28   : > { %433 = vpow2.f32 %v218_v8 }
  0x31   : > { %v432_v9 = vpop.eup %431 }
  0x32   : > { %v434_v10 = vpop.eup %433  ;;  %v220_v11 = vadd.f32 1.0, %v432_v9  ;;  %v223_v13 = vmul.f32 -0.5, %v432_v9  ;;  %v226_v16 = vand.u32 2147483647, %v432_v9 }
  0x33   : > { %v229_v12 = vadd.f32 1.0, %v434_v10  ;;  %v232_v14 = vmul.f32 -0.5, %v434_v10  ;;  %v235_v19 = vand.u32 2147483647, %v434_v10 }
  0x34   : > { %435 = vlog2.f32 %v220_v11  ;;  %v224_v15 = vadd.f32 1.0, %v223_v13  ;;  %vm227_vm0 = vcmp.lt.f32.partialorder %v226_v16, 0.0004427343 }
  0x35   : > { %437 = vlog2.f32 %v229_v12  ;;  %v233_v17 = vadd.f32 1.0, %v232_v14  ;;  %vm236_vm1 = vcmp.lt.f32.partialorder %v235_v19, 0.0004427343 }
  0x36   : > { %v225_v21 = vmul.f32 %v432_v9, %v224_v15 }
  0x37   : > { %v234_v23 = vmul.f32 %v434_v10, %v233_v17 }
  0x3e   : > { %v436_v22 = vpop.eup %435 }
  0x3f   : > { %v438_v25 = vpop.eup %437  ;;  %v222_v26 = vmul.f32 0.6931472, %v436_v22 }
  0x40   : > { %v231_v28 = vmul.f32 0.6931472, %v438_v25 }
  0x41   : > { %v228_v29 = vsel %vm227_vm0, %v225_v21, %v222_v26 }
  0x42   : > { %v237_v30 = vsel %vm236_vm1, %v234_v23, %v231_v28  ;;  %v242_v31 = vadd.f32 %v240_v24, %v228_v29 }
  0x43   : > { %v243_v32 = vadd.f32 %v241_v27, %v237_v30 }
  0x44   : > { %v244_v33 = vsub.f32 0.0, %v242_v31 }
  0x45   : > { %v245_v35 = vsub.f32 0.0, %v243_v32 }
  0x46   : > { %v246_v37 = vmax.f32 %v244_v33, -18.420681  ;;  %v250_v38 = vsub.f32 %v244_v33, %v208_v0 }
  0x47   : > { %v247_v39 = vmax.f32 %v245_v35, -18.420681  ;;  %v251_v40 = vsub.f32 %v245_v35, %v209_v1 }
  0x48   : > { %v248_v41 = vmin.f32 %v246_v37, -1e-08  ;;  %v252_v42 = vmax.f32 %v250_v38, -18.420681 }
  0x49   : > { %v249_v44 = vmin.f32 %v247_v39, -1e-08  ;;  %v253_v45 = vmax.f32 %v251_v40, -18.420681 }
  0x4a   : > { %v254_v48 = vmin.f32 %v252_v42, -1e-08  ;;  %v256_v49 = vmul.f32 %v248_v41, %v210_v34 }
  0x4b   : > { %v255_v50 = vmin.f32 %v253_v45, -1e-08  ;;  %v257_v51 = vmul.f32 %v249_v44, %v211_v36  ;;  %276 = sbr.rel (%p399_p10) target bundleno = 86 (0x56), region = 36 }
  0x4c   : > { %v260_v53 = vmul.f32 %v259_v46, %v256_v49  ;;  %v264_v54 = vmul.f32 %v262_v43, %v254_v48 }
  0x4d   : > { %v261_v55 = vmul.f32 %v259_v46, %v257_v51  ;;  %v265_v56 = vmul.f32 %v263_v47, %v255_v50 }
  0x4e   : > { %v268_v57 = vmul.f32 %v267_v52, %v264_v54 }
  0x4f   : > { %v269_v58 = vmul.f32 %v267_v52, %v265_v56 }
  0x50   : > { %v270_v59 = vadd.f32 %v268_v57, %v260_v53 }
  0x51   : > { %v271_v60 = vadd.f32 %v269_v58, %v261_v55 }
  0x52   : > { %v279_v63 = vadd.f32 %v277_v61, %v270_v59 }
  0x53   : > { %v280_v0 = vadd.f32 %v278_v62, %v271_v60 }
  0x54   : > { %281 = vst [vmem:[%s533_s27] sm:$0xff] %v279_v63 }
  0x55   : > { %282 = vst [vmem:[%s533_s27 + $0x8] sm:$0xff] %v280_v0 }
  0x56 PF: > { %p400_p11 = scmp.lt.s32.totalorder %s467_s17, 1 }
  0x57   : > { %v287_v1 = vlaneseq (!%p400_p11)  ;;  %s401_s6 = sadd.s32 (!%p400_p11), 4294967295, %s467_s17 }
  0x58   : > { %286 = sbr.rel (%p400_p11) target bundleno = 102 (0x66), region = 40  ;;  %s402_s7 = sshll.u32 (!%p400_p11), %s401_s6, 11 }
  0x59   : > { %v288_v2 = vshrl.u32 (!%p400_p11), %v287_v1, 7  ;;  %v291_v3 = vand.u32 (!%p400_p11), 127, %v287_v1  ;;  %s298_s8 = ssub.s32 (!%p400_p11), 0, %s402_s7 }
  0x5a   : > { %v301_v6 = vstv (!%p400_p11), %s298_s8 }
  0x5b   : > { %v292_v4 = vmul.u32 (!%p400_p11), 128, %v288_v2  ;;  %v289_v5 = vadd.s32 (!%p400_p11), 8, %v288_v2  ;;  %v299_v9 = vld [vmem:[%s533_s27] sm:$0xff] (!%p400_p11) }
  0x5c   : > { %v300_v11 = vld [vmem:[%s533_s27 + $0x8] sm:$0xff] (!%p400_p11) }
  0x5d   : > { %v294_v7 = vadd.s32 (!%p400_p11), %v292_v4, %v291_v3  ;;  %v293_v8 = vmul.u32 (!%p400_p11), 128, %v289_v5 }
  0x5f   : > { %vm302_vm2 = vcmp.lt.s32.totalorder %v294_v7, %v301_v6  ;;  %v295_v10 = vadd.s32 %v293_v8, %v291_v3 }
  0x60   : > { %v304_v12 = vsel %vm302_vm2, %v270_v59, 0.0 }
  0x61   : > { %v306_v13 = vadd.f32 %v304_v12, %v299_v9  ;;  %vm303_vm3 = vcmp.lt.s32.totalorder %v295_v10, %v301_v6 }
  0x62   : > { %v305_v14 = vsel %vm303_vm3, %v271_v60, 0.0 }
  0x63   : > { %308 = vst [vmem:[%s533_s27] sm:$0xff] %v306_v13  ;;  %v307_v15 = vadd.f32 %v305_v14, %v300_v11 }
  0x65   : > { %309 = vst [vmem:[%s533_s27 + $0x8] sm:$0xff] %v307_v15 }
  0x66 PF: > { %s19_s19 = sadd.s32 1, %s475_s19   ;;  %s565_s17 = smov %s471_s18 }
  0x67   : > { %p16_p12 = scmp.ge.s32.totalorder %s19_s19, 4   ;;  %s566_s18 = smov %s568_s0 }
  0x69   :  { %18 = sbr.rel (!%p16_p12) target bundleno = 17 (0x11), region = 73 }

</bundles_post_ra>
